<compile_context>
chip_gen: v7x
topology: tpu7x:2x2x1
jax: 0.10.0
libtpu: 0.0.40
codegen_flags: <defaults>
</compile_context>

<pallas_src>
import jax
import jax.numpy as jnp
from jax.experimental import pallas as pl
from jax.experimental.pallas import tpu as pltpu

D_IN, H1, H2, D_OUT = 784, 48, 24, 10
FP = 128          # padded (lane-dense) feature width for all hidden/output features
BN_EPS = 1e-5


# ----------------------------------------------------------------------------- kernels

def _layer1_kernel(x_ref, w1_ref, h1_ref, stats_ref):
    """h1 = x @ W1 (bias dropped, dead under BN); accumulate per-feature sum / sumsq."""
    @pl.when(pl.program_id(0) == 0)
    def _():
        stats_ref[...] = jnp.zeros_like(stats_ref)

    h = jnp.dot(x_ref[...], w1_ref[...], preferred_element_type=jnp.float32)
    h1_ref[...] = h.astype(h1_ref.dtype)
    stats_ref[...] += jnp.concatenate(
        [jnp.sum(h, axis=0, keepdims=True),
         jnp.sum(h * h, axis=0, keepdims=True)], axis=0)


def _layer2_kernel(h1_ref, st1_ref, w2_ref, h2_ref, stats_ref):
    """a1 = relu(h1*s1 + t1) (folded BN); h2 = a1 @ W2; accumulate sum / sumsq of h2."""
    @pl.when(pl.program_id(0) == 0)
    def _():
        stats_ref[...] = jnp.zeros_like(stats_ref)

    st = st1_ref[...]                                  # (2, FP): [scale, shift]
    a1 = jnp.maximum(h1_ref[...].astype(jnp.float32) * st[0:1, :] + st[1:2, :], 0.0)
    h2 = jnp.dot(a1.astype(jnp.bfloat16), w2_ref[...],
                 preferred_element_type=jnp.float32)
    h2_ref[...] = h2.astype(h2_ref.dtype)
    stats_ref[...] += jnp.concatenate(
        [jnp.sum(h2, axis=0, keepdims=True),
         jnp.sum(h2 * h2, axis=0, keepdims=True)], axis=0)


def _layer3_kernel(h2_ref, p_ref, w3_ref, o_ref):
    """a2 = relu(h2*s2 + t2); out = a2 @ W3 + b3 (lane-dense padded output)."""
    p = p_ref[...]                                     # (3, FP): [scale2, shift2, bias3]
    a2 = jnp.maximum(h2_ref[...].astype(jnp.float32) * p[0:1, :] + p[1:2, :], 0.0)
    o_ref[...] = (jnp.dot(a2.astype(jnp.bfloat16), w3_ref[...],
                          preferred_element_type=jnp.float32)
                  + p[2:3, :]).astype(o_ref.dtype)


# ----------------------------------------------------------------------------- wrapper

def _pick_bt(batch):
    """Largest power-of-two batch tile (>=8, <=1024) dividing batch; else whole batch."""
    for cand in (1024, 512, 256, 128, 64, 32, 16, 8):
        if cand <= batch and batch % cand == 0:
            return cand
    return batch


def _fold_bn(stats, gamma_p, beta_p, n):
    """Fold full-batch BN stats into a single scale/shift pair: y = h*s + t."""
    mu = stats[0] / float(n)
    var = jnp.maximum(stats[1] / float(n) - mu * mu, 0.0)
    s = gamma_p * jax.lax.rsqrt(var + BN_EPS)
    t = beta_p - s * mu
    return jnp.stack([s, t], axis=0)                   # (2, FP) float32


def mynet_bn_forward(x, params):
    """x: (B, 1, 28, 28) or (B, 784) float32. Returns (B, 10) float32."""
    (w1, b1, g1, be1, w2, b2, g2, be2, w3, b3) = params
    del b1, b2  # dead under training-mode BatchNorm (mean subtraction cancels them)

    B = x.shape[0]
    x2d = x.reshape(B, -1)                             # == x.view(x.size(0), -1)
    assert x2d.shape[1] == D_IN

    BT = _pick_bt(B)
    nt = B // BT

    # ---- one-time param prep: lane-dense (128-wide) zero-padded weights, bf16 for the MXU
    w1p = jnp.zeros((D_IN, FP), jnp.float32).at[:, :H1].set(w1).astype(jnp.bfloat16)
    w2p = jnp.zeros((FP, FP), jnp.float32).at[:H1, :H2].set(w2).astype(jnp.bfloat16)
    w3p = jnp.zeros((FP, FP), jnp.float32).at[:H2, :D_OUT].set(w3).astype(jnp.bfloat16)
    g1p = jnp.zeros((FP,), jnp.float32).at[:H1].set(g1)
    be1p = jnp.zeros((FP,), jnp.float32).at[:H1].set(be1)
    g2p = jnp.zeros((FP,), jnp.float32).at[:H2].set(g2)
    be2p = jnp.zeros((FP,), jnp.float32).at[:H2].set(be2)
    b3p = jnp.zeros((FP,), jnp.float32).at[:D_OUT].set(b3)

    xb = x2d.astype(jnp.bfloat16)

    # ---- pass 1: h1 = x @ W1 (batch-tiled) + full-batch sum/sumsq of h1
    h1, stats1 = pl.pallas_call(
        _layer1_kernel,
        out_shape=(jax.ShapeDtypeStruct((B, FP), jnp.bfloat16),
                   jax.ShapeDtypeStruct((2, FP), jnp.float32)),
        grid=(nt,),
        in_specs=[pl.BlockSpec((BT, D_IN), lambda i: (i, 0)),
                  pl.BlockSpec((D_IN, FP), lambda i: (0, 0))],
        out_specs=(pl.BlockSpec((BT, FP), lambda i: (i, 0)),
                   pl.BlockSpec((2, FP), lambda i: (0, 0))),
        compiler_params=pltpu.CompilerParams(dimension_semantics=("arbitrary",)),
    )(xb, w1p)
    st1 = _fold_bn(stats1, g1p, be1p, B)               # (2, FP) packed scale/shift

    # ---- pass 2: a1 = relu(BN(h1)); h2 = a1 @ W2; full-batch sum/sumsq of h2
    h2, stats2 = pl.pallas_call(
        _layer2_kernel,
        out_shape=(jax.ShapeDtypeStruct((B, FP), jnp.bfloat16),
                   jax.ShapeDtypeStruct((2, FP), jnp.float32)),
        grid=(nt,),
        in_specs=[pl.BlockSpec((BT, FP), lambda i: (i, 0)),
                  pl.BlockSpec((2, FP), lambda i: (0, 0)),
                  pl.BlockSpec((FP, FP), lambda i: (0, 0))],
        out_specs=(pl.BlockSpec((BT, FP), lambda i: (i, 0)),
                   pl.BlockSpec((2, FP), lambda i: (0, 0))),
        compiler_params=pltpu.CompilerParams(dimension_semantics=("arbitrary",)),
    )(h1, st1, w2p)
    st2 = _fold_bn(stats2, g2p, be2p, B)
    p3 = jnp.concatenate([st2, b3p[None, :]], axis=0)  # (3, FP): [scale2, shift2, bias3]

    # ---- pass 3: out = relu(BN(h2)) @ W3 + b3  (parallel batch axis -> v7x megacore)
    out_pad = pl.pallas_call(
        _layer3_kernel,
        out_shape=jax.ShapeDtypeStruct((B, FP), jnp.float32),
        grid=(nt,),
        in_specs=[pl.BlockSpec((BT, FP), lambda i: (i, 0)),
                  pl.BlockSpec((3, FP), lambda i: (0, 0)),
                  pl.BlockSpec((FP, FP), lambda i: (0, 0))],
        out_specs=pl.BlockSpec((BT, FP), lambda i: (i, 0)),
        compiler_params=pltpu.CompilerParams(dimension_semantics=("parallel",)),
    )(h2, p3, w3p)

    return out_pad[:, :D_OUT]


# ----------------------------------------------------------------------------- init / reference

def init_params(key):
    """PyTorch-default-style init; Linear weights stored transposed as (in, out)."""
    ks = jax.random.split(key, 8)

    def lin(kw, kb, fan_in, fan_out):
        bound = 1.0 / jnp.sqrt(float(fan_in))
        w = jax.random.uniform(kw, (fan_in, fan_out), jnp.float32, -bound, bound)
        b = jax.random.uniform(kb, (fan_out,), jnp.float32, -bound, bound)
        return w, b

    w1, b1 = lin(ks[0], ks[1], D_IN, H1)
    w2, b2 = lin(ks[2], ks[3], H1, H2)
    w3, b3 = lin(ks[4], ks[5], H2, D_OUT)
    g1, be1 = jnp.ones((H1,), jnp.float32), jnp.zeros((H1,), jnp.float32)
    g2, be2 = jnp.ones((H2,), jnp.float32), jnp.zeros((H2,), jnp.float32)
    return (w1, b1, g1, be1, w2, b2, g2, be2, w3, b3)


def _reference(x, params):
    """Original-module semantics (training-mode BN, biases included), pure f32 JAX."""
    (w1, b1, g1, be1, w2, b2, g2, be2, w3, b3) = params
    h = x.reshape(x.shape[0], -1) @ w1 + b1
    h = jnp.maximum(g1 * (h - h.mean(0)) * jax.lax.rsqrt(h.var(0) + BN_EPS) + be1, 0.0)
    h = h @ w2 + b2
    h = jnp.maximum(g2 * (h - h.mean(0)) * jax.lax.rsqrt(h.var(0) + BN_EPS) + be2, 0.0)
    return h @ w3 + b3


# ----------------------------------------------------------------------------- main

if __name__ == "__main__":
    key = jax.random.PRNGKey(0)
    k_x, k_p = jax.random.split(key)

    B = 8  # small demo batch; BatchNorm (training mode) needs B > 1
    x = jax.random.normal(k_x, (B, 1, 28, 28), jnp.float32)
    params = init_params(k_p)

    fwd = jax.jit(mynet_bn_forward)
    out = jax.block_until_ready(fwd(x, params))

    ref = _reference(x, params)
    assert out.shape == (B, D_OUT)
    # Loose tolerance covers intentional bf16 MXU-input rounding (f32 accumulation throughout).
    max_err = float(jnp.max(jnp.abs(out - ref)))
    assert jnp.allclose(out, ref, atol=3e-2, rtol=3e-2), f"mismatch vs reference (max abs err {max_err})"

    print("KERNEL_OK")
</pallas_src>

<mosaic_0001>
module attributes {stable_mosaic.version = 11 : i64} {
  func.func @_layer1_kernel(%arg0: i32, %arg1: memref<8x784xbf16, #tpu.memory_space<vmem>>, %arg2: memref<784x128xbf16, #tpu.memory_space<vmem>>, %arg3: memref<8x128xbf16, #tpu.memory_space<vmem>>, %arg4: memref<2x128xf32, #tpu.memory_space<vmem>>) attributes {dimension_semantics = [#tpu.dimension_semantics<arbitrary>], iteration_bounds = array<i64: 1>, scalar_prefetch = 0 : i64, scratch_operands = 0 : i64, tpu.core_type = #tpu.core_type<tc>, window_params = [{transform_indices = @transform_0, window_bounds = array<i64: 8, 784>}, {pipeline_mode = #tpu.pipeline_mode<synchronous>, transform_indices = @transform_1, window_bounds = array<i64: 784, 128>}, {transform_indices = @transform_2, window_bounds = array<i64: 8, 128>}, {pipeline_mode = #tpu.pipeline_mode<synchronous>, transform_indices = @transform_3, window_bounds = array<i64: 2, 128>}]} {
    %c0_i32 = arith.constant 0 : i32
    %0 = arith.cmpi eq, %arg0, %c0_i32 : i32
    %1 = arith.extui %0 : i1 to i32
    %c0_i32_0 = arith.constant 0 : i32
    %2 = arith.cmpi ne, %1, %c0_i32_0 : i32
    scf.if %2 {
      %cst_12 = arith.constant 0.000000e+00 : f32
      %17 = vector.broadcast %cst_12 : f32 to vector<2x128xf32>
      %c0_13 = arith.constant 0 : index
      %c0_14 = arith.constant 0 : index
      %18 = vector.load %arg4[%c0_13, %c0_14] : memref<2x128xf32, #tpu.memory_space<vmem>>, vector<2x128xf32>
      tpu.vector_store %arg4[%c0_13, %c0_14], %17 {strides = array<i32>} : memref<2x128xf32, #tpu.memory_space<vmem>>, vector<2x128xf32>,
    } else {
    }
    %c0 = arith.constant 0 : index
    %c0_1 = arith.constant 0 : index
    %3 = vector.load %arg1[%c0, %c0_1] : memref<8x784xbf16, #tpu.memory_space<vmem>>, vector<8x784xbf16>
    %c0_2 = arith.constant 0 : index
    %c0_3 = arith.constant 0 : index
    %4 = vector.load %arg2[%c0_2, %c0_3] : memref<784x128xbf16, #tpu.memory_space<vmem>>, vector<784x128xbf16>
    %cst = arith.constant dense<0.000000e+00> : vector<8x128xf32>
    %5 = tpu.matmul %3, %4, %cst {dimension_numbers = #tpu.dot_dimension_numbers<[1], [0], [0], [1], [0, 0, 1, 1], [], []>} : vector<8x784xbf16>, vector<784x128xbf16>, vector<8x128xf32> -> vector<8x128xf32>
    %6 = arith.truncf %5 : vector<8x128xf32> to vector<8x128xbf16>
    %c0_4 = arith.constant 0 : index
    %c0_5 = arith.constant 0 : index
    %7 = vector.load %arg3[%c0_4, %c0_5] : memref<8x128xbf16, #tpu.memory_space<vmem>>, vector<8x128xbf16>
    tpu.vector_store %arg3[%c0_4, %c0_5], %6 {strides = array<i32>} : memref<8x128xbf16, #tpu.memory_space<vmem>>, vector<8x128xbf16>,
    %c0_6 = arith.constant 0 : index
    %c0_7 = arith.constant 0 : index
    %8 = vector.load %arg4[%c0_6, %c0_7] : memref<2x128xf32, #tpu.memory_space<vmem>>, vector<2x128xf32>
    %cst_8 = arith.constant dense<0.000000e+00> : vector<128xf32>
    %9 = vector.multi_reduction <add>, %5, %cst_8 [0] : vector<8x128xf32> to vector<128xf32>
    %10 = vector.shape_cast %9 : vector<128xf32> to vector<1x128xf32>
    %11 = arith.mulf %5, %5 : vector<8x128xf32>
    %cst_9 = arith.constant dense<0.000000e+00> : vector<128xf32>
    %12 = vector.multi_reduction <add>, %11, %cst_9 [0] : vector<8x128xf32> to vector<128xf32>
    %13 = vector.shape_cast %12 : vector<128xf32> to vector<1x128xf32>
    %14 = tpu.concatenate %10, %13 in 0 : vector<1x128xf32>, vector<1x128xf32> -> vector<2x128xf32>
    %15 = arith.addf %8, %14 : vector<2x128xf32>
    %c0_10 = arith.constant 0 : index
    %c0_11 = arith.constant 0 : index
    %16 = vector.load %arg4[%c0_10, %c0_11] : memref<2x128xf32, #tpu.memory_space<vmem>>, vector<2x128xf32>
    tpu.vector_store %arg4[%c0_10, %c0_11], %15 {strides = array<i32>} : memref<2x128xf32, #tpu.memory_space<vmem>>, vector<2x128xf32>,
    return
  }
  func.func @transform_0(%arg0: i32) -> (i32, i32) {
    %c0_i32 = arith.constant 0 : i32
    %c0_i32_0 = arith.constant 0 : i32
    return %arg0, %c0_i32 : i32, i32
  }
  func.func @transform_1(%arg0: i32) -> (i32, i32) {
    %c0_i32 = arith.constant 0 : i32
    %c0_i32_0 = arith.constant 0 : i32
    %c0_i32_1 = arith.constant 0 : i32
    return %c0_i32, %c0_i32_0 : i32, i32
  }
  func.func @transform_2(%arg0: i32) -> (i32, i32) {
    %c0_i32 = arith.constant 0 : i32
    %c0_i32_0 = arith.constant 0 : i32
    return %arg0, %c0_i32 : i32, i32
  }
  func.func @transform_3(%arg0: i32) -> (i32, i32) {
    %c0_i32 = arith.constant 0 : i32
    %c0_i32_0 = arith.constant 0 : i32
    %c0_i32_1 = arith.constant 0 : i32
    return %c0_i32, %c0_i32_0 : i32, i32
  }
}

module attributes {stable_mosaic.version = 11 : i64} {
  func.func @_layer2_kernel(%arg0: i32, %arg1: memref<8x128xbf16, #tpu.memory_space<vmem>>, %arg2: memref<2x128xf32, #tpu.memory_space<vmem>>, %arg3: memref<128x128xbf16, #tpu.memory_space<vmem>>, %arg4: memref<8x128xbf16, #tpu.memory_space<vmem>>, %arg5: memref<2x128xf32, #tpu.memory_space<vmem>>) attributes {dimension_semantics = [#tpu.dimension_semantics<arbitrary>], iteration_bounds = array<i64: 1>, scalar_prefetch = 0 : i64, scratch_operands = 0 : i64, tpu.core_type = #tpu.core_type<tc>, window_params = [{transform_indices = @transform_0, window_bounds = array<i64: 8, 128>}, {pipeline_mode = #tpu.pipeline_mode<synchronous>, transform_indices = @transform_1, window_bounds = array<i64: 2, 128>}, {pipeline_mode = #tpu.pipeline_mode<synchronous>, transform_indices = @transform_2, window_bounds = array<i64: 128, 128>}, {transform_indices = @transform_3, window_bounds = array<i64: 8, 128>}, {pipeline_mode = #tpu.pipeline_mode<synchronous>, transform_indices = @transform_4, window_bounds = array<i64: 2, 128>}]} {
    %c0_i32 = arith.constant 0 : i32
    %0 = arith.cmpi eq, %arg0, %c0_i32 : i32
    %1 = arith.extui %0 : i1 to i32
    %c0_i32_0 = arith.constant 0 : i32
    %2 = arith.cmpi ne, %1, %c0_i32_0 : i32
    scf.if %2 {
      %cst_15 = arith.constant 0.000000e+00 : f32
      %28 = vector.broadcast %cst_15 : f32 to vector<2x128xf32>
      %c0_16 = arith.constant 0 : index
      %c0_17 = arith.constant 0 : index
      %29 = vector.load %arg5[%c0_16, %c0_17] : memref<2x128xf32, #tpu.memory_space<vmem>>, vector<2x128xf32>
      tpu.vector_store %arg5[%c0_16, %c0_17], %28 {strides = array<i32>} : memref<2x128xf32, #tpu.memory_space<vmem>>, vector<2x128xf32>,
    } else {
    }
    %c0 = arith.constant 0 : index
    %c0_1 = arith.constant 0 : index
    %3 = vector.load %arg2[%c0, %c0_1] : memref<2x128xf32, #tpu.memory_space<vmem>>, vector<2x128xf32>
    %c0_2 = arith.constant 0 : index
    %c0_3 = arith.constant 0 : index
    %4 = vector.load %arg1[%c0_2, %c0_3] : memref<8x128xbf16, #tpu.memory_space<vmem>>, vector<8x128xbf16>
    %5 = arith.extf %4 : vector<8x128xbf16> to vector<8x128xf32>
    %6 = vector.extract_strided_slice %3 {offsets = [0, 0], sizes = [1, 128], strides = [1, 1]} : vector<2x128xf32> to vector<1x128xf32>
    %7 = vector.broadcast %6 : vector<1x128xf32> to vector<8x128xf32>
    %8 = arith.mulf %5, %7 : vector<8x128xf32>
    %9 = vector.extract_strided_slice %3 {offsets = [1, 0], sizes = [1, 128], strides = [1, 1]} : vector<2x128xf32> to vector<1x128xf32>
    %10 = vector.broadcast %9 : vector<1x128xf32> to vector<8x128xf32>
    %11 = arith.addf %8, %10 : vector<8x128xf32>
    %cst = arith.constant 0.000000e+00 : f32
    %12 = vector.broadcast %cst : f32 to vector<8x128xf32>
    %13 = arith.maximumf %11, %12 : vector<8x128xf32>
    %14 = arith.truncf %13 : vector<8x128xf32> to vector<8x128xbf16>
    %c0_4 = arith.constant 0 : index
    %c0_5 = arith.constant 0 : index
    %15 = vector.load %arg3[%c0_4, %c0_5] : memref<128x128xbf16, #tpu.memory_space<vmem>>, vector<128x128xbf16>
    %cst_6 = arith.constant dense<0.000000e+00> : vector<8x128xf32>
    %16 = tpu.matmul %14, %15, %cst_6 {dimension_numbers = #tpu.dot_dimension_numbers<[1], [0], [0], [1], [0, 0, 1, 1], [], []>} : vector<8x128xbf16>, vector<128x128xbf16>, vector<8x128xf32> -> vector<8x128xf32>
    %17 = arith.truncf %16 : vector<8x128xf32> to vector<8x128xbf16>
    %c0_7 = arith.constant 0 : index
    %c0_8 = arith.constant 0 : index
    %18 = vector.load %arg4[%c0_7, %c0_8] : memref<8x128xbf16, #tpu.memory_space<vmem>>, vector<8x128xbf16>
    tpu.vector_store %arg4[%c0_7, %c0_8], %17 {strides = array<i32>} : memref<8x128xbf16, #tpu.memory_space<vmem>>, vector<8x128xbf16>,
    %c0_9 = arith.constant 0 : index
    %c0_10 = arith.constant 0 : index
    %19 = vector.load %arg5[%c0_9, %c0_10] : memref<2x128xf32, #tpu.memory_space<vmem>>, vector<2x128xf32>
    %cst_11 = arith.constant dense<0.000000e+00> : vector<128xf32>
    %20 = vector.multi_reduction <add>, %16, %cst_11 [0] : vector<8x128xf32> to vector<128xf32>
    %21 = vector.shape_cast %20 : vector<128xf32> to vector<1x128xf32>
    %22 = arith.mulf %16, %16 : vector<8x128xf32>
    %cst_12 = arith.constant dense<0.000000e+00> : vector<128xf32>
    %23 = vector.multi_reduction <add>, %22, %cst_12 [0] : vector<8x128xf32> to vector<128xf32>
    %24 = vector.shape_cast %23 : vector<128xf32> to vector<1x128xf32>
    %25 = tpu.concatenate %21, %24 in 0 : vector<1x128xf32>, vector<1x128xf32> -> vector<2x128xf32>
    %26 = arith.addf %19, %25 : vector<2x128xf32>
    %c0_13 = arith.constant 0 : index
    %c0_14 = arith.constant 0 : index
    %27 = vector.load %arg5[%c0_13, %c0_14] : memref<2x128xf32, #tpu.memory_space<vmem>>, vector<2x128xf32>
    tpu.vector_store %arg5[%c0_13, %c0_14], %26 {strides = array<i32>} : memref<2x128xf32, #tpu.memory_space<vmem>>, vector<2x128xf32>,
    return
  }
  func.func @transform_0(%arg0: i32) -> (i32, i32) {
    %c0_i32 = arith.constant 0 : i32
    %c0_i32_0 = arith.constant 0 : i32
    return %arg0, %c0_i32 : i32, i32
  }
  func.func @transform_1(%arg0: i32) -> (i32, i32) {
    %c0_i32 = arith.constant 0 : i32
    %c0_i32_0 = arith.constant 0 : i32
    %c0_i32_1 = arith.constant 0 : i32
    return %c0_i32, %c0_i32_0 : i32, i32
  }
  func.func @transform_2(%arg0: i32) -> (i32, i32) {
    %c0_i32 = arith.constant 0 : i32
    %c0_i32_0 = arith.constant 0 : i32
    %c0_i32_1 = arith.constant 0 : i32
    return %c0_i32, %c0_i32_0 : i32, i32
  }
  func.func @transform_3(%arg0: i32) -> (i32, i32) {
    %c0_i32 = arith.constant 0 : i32
    %c0_i32_0 = arith.constant 0 : i32
    return %arg0, %c0_i32 : i32, i32
  }
  func.func @transform_4(%arg0: i32) -> (i32, i32) {
    %c0_i32 = arith.constant 0 : i32
    %c0_i32_0 = arith.constant 0 : i32
    %c0_i32_1 = arith.constant 0 : i32
    return %c0_i32, %c0_i32_0 : i32, i32
  }
}

module attributes {stable_mosaic.version = 11 : i64} {
  func.func @_layer3_kernel(%arg0: i32, %arg1: memref<8x128xbf16, #tpu.memory_space<vmem>>, %arg2: memref<3x128xf32, #tpu.memory_space<vmem>>, %arg3: memref<128x128xbf16, #tpu.memory_space<vmem>>, %arg4: memref<8x128xf32, #tpu.memory_space<vmem>>) attributes {dimension_semantics = [#tpu.dimension_semantics<parallel>], iteration_bounds = array<i64: 1>, scalar_prefetch = 0 : i64, scratch_operands = 0 : i64, tpu.core_type = #tpu.core_type<tc>, window_params = [{transform_indices = @transform_0, window_bounds = array<i64: 8, 128>}, {pipeline_mode = #tpu.pipeline_mode<synchronous>, transform_indices = @transform_1, window_bounds = array<i64: 3, 128>}, {pipeline_mode = #tpu.pipeline_mode<synchronous>, transform_indices = @transform_2, window_bounds = array<i64: 128, 128>}, {transform_indices = @transform_3, window_bounds = array<i64: 8, 128>}]} {
    %c0 = arith.constant 0 : index
    %c0_0 = arith.constant 0 : index
    %0 = vector.load %arg2[%c0, %c0_0] : memref<3x128xf32, #tpu.memory_space<vmem>>, vector<3x128xf32>
    %c0_1 = arith.constant 0 : index
    %c0_2 = arith.constant 0 : index
    %1 = vector.load %arg1[%c0_1, %c0_2] : memref<8x128xbf16, #tpu.memory_space<vmem>>, vector<8x128xbf16>
    %2 = arith.extf %1 : vector<8x128xbf16> to vector<8x128xf32>
    %3 = vector.extract_strided_slice %0 {offsets = [0, 0], sizes = [1, 128], strides = [1, 1]} : vector<3x128xf32> to vector<1x128xf32>
    %4 = vector.broadcast %3 : vector<1x128xf32> to vector<8x128xf32>
    %5 = arith.mulf %2, %4 : vector<8x128xf32>
    %6 = vector.extract_strided_slice %0 {offsets = [1, 0], sizes = [1, 128], strides = [1, 1]} : vector<3x128xf32> to vector<1x128xf32>
    %7 = vector.broadcast %6 : vector<1x128xf32> to vector<8x128xf32>
    %8 = arith.addf %5, %7 : vector<8x128xf32>
    %cst = arith.constant 0.000000e+00 : f32
    %9 = vector.broadcast %cst : f32 to vector<8x128xf32>
    %10 = arith.maximumf %8, %9 : vector<8x128xf32>
    %11 = arith.truncf %10 : vector<8x128xf32> to vector<8x128xbf16>
    %c0_3 = arith.constant 0 : index
    %c0_4 = arith.constant 0 : index
    %12 = vector.load %arg3[%c0_3, %c0_4] : memref<128x128xbf16, #tpu.memory_space<vmem>>, vector<128x128xbf16>
    %cst_5 = arith.constant dense<0.000000e+00> : vector<8x128xf32>
    %13 = tpu.matmul %11, %12, %cst_5 {dimension_numbers = #tpu.dot_dimension_numbers<[1], [0], [0], [1], [0, 0, 1, 1], [], []>} : vector<8x128xbf16>, vector<128x128xbf16>, vector<8x128xf32> -> vector<8x128xf32>
    %14 = vector.extract_strided_slice %0 {offsets = [2, 0], sizes = [1, 128], strides = [1, 1]} : vector<3x128xf32> to vector<1x128xf32>
    %15 = vector.broadcast %14 : vector<1x128xf32> to vector<8x128xf32>
    %16 = arith.addf %13, %15 : vector<8x128xf32>
    %c0_6 = arith.constant 0 : index
    %c0_7 = arith.constant 0 : index
    %17 = vector.load %arg4[%c0_6, %c0_7] : memref<8x128xf32, #tpu.memory_space<vmem>>, vector<8x128xf32>
    tpu.vector_store %arg4[%c0_6, %c0_7], %16 {strides = array<i32>} : memref<8x128xf32, #tpu.memory_space<vmem>>, vector<8x128xf32>,
    return
  }
  func.func @transform_0(%arg0: i32) -> (i32, i32) {
    %c0_i32 = arith.constant 0 : i32
    %c0_i32_0 = arith.constant 0 : i32
    return %arg0, %c0_i32 : i32, i32
  }
  func.func @transform_1(%arg0: i32) -> (i32, i32) {
    %c0_i32 = arith.constant 0 : i32
    %c0_i32_0 = arith.constant 0 : i32
    %c0_i32_1 = arith.constant 0 : i32
    return %c0_i32, %c0_i32_0 : i32, i32
  }
  func.func @transform_2(%arg0: i32) -> (i32, i32) {
    %c0_i32 = arith.constant 0 : i32
    %c0_i32_0 = arith.constant 0 : i32
    %c0_i32_1 = arith.constant 0 : i32
    return %c0_i32, %c0_i32_0 : i32, i32
  }
  func.func @transform_3(%arg0: i32) -> (i32, i32) {
    %c0_i32 = arith.constant 0 : i32
    %c0_i32_0 = arith.constant 0 : i32
    return %arg0, %c0_i32 : i32, i32
  }
}

</mosaic_0001>

<bundles_post_ra>
// kernel: mynet_bn_forward.4
= control target key start
LH: loop header
LB: loop body
LE: loop exit
PB: predicated region body
PF: predicated region fallthrough
CT: control target
= control target key end

     0   :  { %v216_v0 = vmov 0.0   ;;  %vm217_vm0 = vmmov 0   ;;  %v25_v2 = vlaneseq  ;;  %vm157_vm1 = vcmask 1040384   ;;  %s285_s2 = inlined_call_operand.vmem [shape: bf16[128,128], index: 2, kind: input, shape index: {}]   ;;  %s286_s4 = inlined_call_operand.vmem [shape: f32[2,128], index: 4, kind: output, shape index: {1}]   ;;  %s287_s0 = inlined_call_operand.vmem [shape: bf16[8,128], index: 0, kind: input, shape index: {}]   ;;  %s288_s1 = inlined_call_operand.vmem [shape: f32[2,128], index: 1, kind: input, shape index: {}]   ;;  %s289_s3 = inlined_call_operand.vmem [shape: bf16[8,128], index: 3, kind: output, shape index: {0}]  }
   0x1   :  { %186 = vmatprep.subr.bf16.mxu0 %v216_v0  ;;  %v208_v1 = vld [vmem:[%s285_s2] sm:$0xff]   ;;  %202 = vmatprep.mubr.msk.bf16.mxu0 %vm217_vm0, %v216_v0  ;;  %21 = vst [vmem:[%s286_s4] sm:$0x3] %v216_v0  ;;  %v209_v3 = vld [vmem:[%s285_s2 + $0x8] sm:$0xff]   ;;  %v210_v5 = vld [vmem:[%s285_s2 + $0x10] sm:$0xff]  }
   0x2   :  { %187 = vmatpush3.bf16.msra.mxu0 %v208_v1  ;;  %v26_v4 = vshrl.u32 %v25_v2, 7  ;;  %v211_v7 = vld [vmem:[%s285_s2 + $0x18] sm:$0xff]   ;;  %v22_v8 = vld [vmem:[%s288_s1] sm:$0x3]  ;;  %v213_v16 = vld [vmem:[%s285_s2 + $0x28] sm:$0xff]  }
   0x3   :  { %188 = vmatprep.subr.bf16.mxu0 %v216_v0  ;;  %v23_v9 = vld [vmem:[%s287_s0] sm:$0xf]  ;;  %v214_v18 = vld [vmem:[%s285_s2 + $0x30] sm:$0xff]   ;;  %v215_v20 = vld [vmem:[%s285_s2 + $0x38] sm:$0xff]  }
   0x4   :  { %v27_v6 = vsub.s32 0, %v26_v4  ;;  %v24_v10 = vunpack.c.l.bf16 %v23_v9  ;;  %v32_v12 = vsub.s32 1, %v26_v4  ;;  %v212_v13 = vld [vmem:[%s285_s2 + $0x20] sm:$0xff]  }
   0x6   :  { %189 = vmatpush3.bf16.msra.mxu0 %v209_v3  ;;  %v28_v11 = vrot.slane %v22_v8, %v27_v6  ;;  %v33_v15 = vrot.slane %v22_v8, %v32_v12 }
   0x7   :  { %190 = vmatprep.subr.bf16.mxu0 %v216_v0 }
   0x8   :  { %v29_v14 = vmul.f32 %v28_v11, %v24_v10  ;;  %v143_v38 = vld [vmem:[%s286_s4] sm:$0x3] }
   0xa   :  { %191 = vmatpush3.bf16.msra.mxu0 %v210_v5  ;;  %v34_v17 = vadd.f32 %v33_v15, %v29_v14 }
   0xb   :  { %192 = vmatprep.subr.bf16.mxu0 %v216_v0 }
   0xc   :  { %v35_v19 = vmax.f32 %v34_v17, 0.0 }
   0xe   :  { %193 = vmatpush3.bf16.msra.mxu0 %v211_v7  ;;  %v36_v21 = vpack.c.bf16 %v35_v19, %v35_v19 }
   0xf   :  { %194 = vmatprep.subr.bf16.mxu0 %v216_v0 }
  0x12   :  { %195 = vmatpush3.bf16.msra.mxu0 %v212_v13 }
  0x13   :  { %196 = vmatprep.subr.bf16.mxu0 %v216_v0 }
  0x16   :  { %197 = vmatpush3.bf16.msra.mxu0 %v213_v16 }
  0x17   :  { %198 = vmatprep.subr.bf16.mxu0 %v216_v0 }
  0x1a   :  { %199 = vmatpush3.bf16.msra.mxu0 %v214_v18 }
  0x1b   :  { %200 = vmatprep.subr.bf16.mxu0 %v216_v0 }
  0x1e   :  { %201 = vmatpush3.bf16.msra.mxu0 %v215_v20 }
  0x21   :  { %203 = vmatmul.mubr.bf16.vlgmr.msra.gmra.mrb[0].mxu0 %v36_v21 }
  0xf4   :  { %v135_v22 = vpop.f32.mrb[0].mxu0 }
  0xf5   :  { %v141_v23 = vpack.c.bf16 %v135_v22, %v135_v22  ;;  %v144_v24 = vrot.slane %v135_v22, 4  ;;  %v150_v25 = vmul.f32 %v135_v22, %v135_v22  ;;  %v204_v26 = vpop.f32.mrb[1].mxu0 }
  0xf6   :  { %v138_v27 = vpop.f32.mrb[2].mxu0 }
  0xf7   :  { %142 = vst [vmem:[%s289_s3] sm:$0xf] %v141_v23  ;;  %v145_v28 = vadd.f32 %v144_v24, %v135_v22  ;;  %v151_v29 = vrot.slane %v150_v25, 4  ;;  %v205_v30 = vpop.f32.mrb[3].mxu0 }
  0xf9   :  { %v146_v31 = vrot.slane %v145_v28, 2  ;;  %v152_v32 = vadd.f32 %v151_v29, %v150_v25 }
  0xfb   :  { %v147_v33 = vadd.f32 %v146_v31, %v145_v28  ;;  %v153_v34 = vrot.slane %v152_v32, 2 }
  0xfd   :  { %v148_v35 = vrot.slane %v147_v33, 1  ;;  %v154_v36 = vadd.f32 %v153_v34, %v152_v32 }
  0xff   :  { %v155_v37 = vrot.slane %v154_v36, 1  ;;  %v149_v39 = vadd.f32 %v148_v35, %v147_v33 }
 0x101   :  { %v156_v40 = vadd.f32 %v155_v37, %v154_v36 }
 0x103   :  { %v158_v41 = vsel %vm157_vm1, %v149_v39, %v156_v40 }
 0x104   :  { %v159_v42 = vadd.f32 %v158_v41, %v143_v38 }
 0x106   :  { %160 = vst [vmem:[%s286_s4] sm:$0x3] %v159_v42 }

// kernel: mynet_bn_forward.3
= control target key start
LH: loop header
LB: loop body
LE: loop exit
PB: predicated region body
PF: predicated region fallthrough
CT: control target
= control target key end

     0   :  { %v820_v1 = vmov 0.0   ;;  %vm821_vm0 = vmmov 0   ;;  %vm439_vm1 = vcmask 130048   ;;  %vm619_vm2 = vcmask 1040384   ;;  %s1016_s1 = inlined_call_operand.vmem [shape: bf16[784,128], index: 1, kind: input, shape index: {}]   ;;  %s1017_s3 = inlined_call_operand.vmem [shape: f32[2,128], index: 3, kind: output, shape index: {1}]   ;;  %s1018_s0 = inlined_call_operand.vmem [shape: bf16[8,784], index: 0, kind: input, shape index: {}]   ;;  %s1019_s2 = inlined_call_operand.vmem [shape: bf16[8,128], index: 2, kind: output, shape index: {0}]  }
   0x1   :  { %v764_v0 = vld [vmem:[%s1016_s1 + $0x40] sm:$0xff]   ;;  %18 = vst [vmem:[%s1017_s3] sm:$0x3] %v820_v1  ;;  %v768_v5 = vld [vmem:[%s1016_s1 + $0x48] sm:$0xff]   ;;  %v772_v9 = vld [vmem:[%s1016_s1 + $0x50] sm:$0xff]  }
   0x2   :  { %v765_v2 = vld [vmem:[%s1016_s1 + $0xc0] sm:$0xff]   ;;  %688 = vmatprep.subr.bf16.mxu0 %v764_v0  ;;  %v769_v6 = vld [vmem:[%s1016_s1 + $0xc8] sm:$0xff]   ;;  %v773_v10 = vld [vmem:[%s1016_s1 + $0xd0] sm:$0xff]  }
   0x3   :  { %v766_v3 = vld [vmem:[%s1016_s1] sm:$0xff]   ;;  %710 = vmatprep.subr.bf16.mxu1 %v765_v2  ;;  %v770_v7 = vld [vmem:[%s1016_s1 + $0x8] sm:$0xff]   ;;  %v774_v11 = vld [vmem:[%s1016_s1 + $0x10] sm:$0xff]  }
   0x4   :  { %v767_v4 = vld [vmem:[%s1016_s1 + $0x80] sm:$0xff]   ;;  %689 = vmatpush3.bf16.msra.mxu0 %v766_v3  ;;  %v771_v8 = vld [vmem:[%s1016_s1 + $0x88] sm:$0xff]   ;;  %v775_v12 = vld [vmem:[%s1016_s1 + $0x90] sm:$0xff]  }
   0x5   :  { %711 = vmatpush3.bf16.msra.mxu1 %v767_v4  ;;  %690 = vmatprep.subr.bf16.mxu0 %v768_v5  ;;  %v776_v13 = vld [vmem:[%s1016_s1 + $0x58] sm:$0xff]   ;;  %v780_v17 = vld [vmem:[%s1016_s1 + $0x60] sm:$0xff]   ;;  %v784_v21 = vld [vmem:[%s1016_s1 + $0x68] sm:$0xff]  }
   0x6   :  { %712 = vmatprep.subr.bf16.mxu1 %v769_v6  ;;  %v777_v14 = vld [vmem:[%s1016_s1 + $0xd8] sm:$0xff]   ;;  %v781_v18 = vld [vmem:[%s1016_s1 + $0xe0] sm:$0xff]   ;;  %v785_v22 = vld [vmem:[%s1016_s1 + $0xe8] sm:$0xff]  }
   0x7   :  { %v778_v15 = vld [vmem:[%s1016_s1 + $0x18] sm:$0xff]   ;;  %v782_v19 = vld [vmem:[%s1016_s1 + $0x20] sm:$0xff]   ;;  %v786_v23 = vld [vmem:[%s1016_s1 + $0x28] sm:$0xff]  }
   0x8   :  { %691 = vmatpush3.bf16.msra.mxu0 %v770_v7  ;;  %v779_v16 = vld [vmem:[%s1016_s1 + $0x98] sm:$0xff]   ;;  %v783_v20 = vld [vmem:[%s1016_s1 + $0xa0] sm:$0xff]   ;;  %v787_v24 = vld [vmem:[%s1016_s1 + $0xa8] sm:$0xff]  }
   0x9   :  { %713 = vmatpush3.bf16.msra.mxu1 %v771_v8  ;;  %692 = vmatprep.subr.bf16.mxu0 %v772_v9  ;;  %v788_v25 = vld [vmem:[%s1016_s1 + $0x70] sm:$0xff]   ;;  %v792_v29 = vld [vmem:[%s1016_s1 + $0x78] sm:$0xff]   ;;  %v19_v33 = vld [vmem:[%s1018_s0] sm:$0xff] }
   0xa   :  { %714 = vmatprep.subr.bf16.mxu1 %v773_v10  ;;  %v789_v26 = vld [vmem:[%s1016_s1 + $0xf0] sm:$0xff]   ;;  %v793_v30 = vld [vmem:[%s1016_s1 + $0xf8] sm:$0xff]   ;;  %v631_v34 = vcombine.low %v19_v33, %v19_v33  ;;  %v632_v35 = vcombine.high %v19_v33, %v19_v33  ;;  %v20_v36 = vld [vmem:[%s1018_s0 + $0x8] sm:$0xff] }
   0xb   :  { %v790_v27 = vld [vmem:[%s1016_s1 + $0x30] sm:$0xff]   ;;  %v794_v31 = vld [vmem:[%s1016_s1 + $0x38] sm:$0xff]   ;;  %v633_v37 = vcombine.low %v20_v36, %v20_v36  ;;  %v634_v38 = vcombine.high %v20_v36, %v20_v36  ;;  %v801_v39 = vld [vmem:[%s1016_s1 + $0x140] sm:$0xff]  }
   0xc   :  { %693 = vmatpush3.bf16.msra.mxu0 %v774_v11  ;;  %v791_v28 = vld [vmem:[%s1016_s1 + $0xb0] sm:$0xff]   ;;  %v795_v32 = vld [vmem:[%s1016_s1 + $0xb8] sm:$0xff]   ;;  %475 = vmatprep.mubr.bf16.mxu0 %v632_v35  ;;  %v802_v40 = vld [vmem:[%s1016_s1 + $0x100] sm:$0xff]  }
   0xd   :  { %715 = vmatpush3.bf16.msra.mxu1 %v775_v12  ;;  %694 = vmatprep.subr.bf16.mxu0 %v776_v13  ;;  %v803_v41 = vld [vmem:[%s1016_s1 + $0x148] sm:$0xff]   ;;  %v805_v43 = vld [vmem:[%s1016_s1 + $0x150] sm:$0xff]   ;;  %v807_v45 = vld [vmem:[%s1016_s1 + $0x158] sm:$0xff]  }
   0xe   :  { %716 = vmatprep.subr.bf16.mxu1 %v777_v14  ;;  %515 = vmatprep.mubr.bf16.mxu1 %v634_v38  ;;  %v804_v42 = vld [vmem:[%s1016_s1 + $0x108] sm:$0xff]   ;;  %v806_v44 = vld [vmem:[%s1016_s1 + $0x110] sm:$0xff]   ;;  %v808_v46 = vld [vmem:[%s1016_s1 + $0x118] sm:$0xff]  }
   0xf   :  { %v809_v47 = vld [vmem:[%s1016_s1 + $0x160] sm:$0xff]   ;;  %v21_v50 = vld [vmem:[%s1018_s0 + $0x10] sm:$0xff]  ;;  %v798_v51 = vld [vmem:[%s1018_s0 + $0x18] ss:$0 sps:$4 sm:$0xff]  }
  0x10   :  { %695 = vmatpush3.bf16.msra.mxu0 %v778_v15  ;;  %v810_v48 = vld [vmem:[%s1016_s1 + $0x120] sm:$0xff]   ;;  %v811_v52 = vld [vmem:[%s1016_s1 + $0x168] sm:$0xff]   ;;  %v636_v53 = vcombine.high %v21_v50, %v21_v50  ;;  %v813_v55 = vld [vmem:[%s1016_s1 + $0x170] sm:$0xff]   ;;  %v635_v59 = vcombine.low %v21_v50, %v21_v50 }
  0x11   :  { %717 = vmatpush3.bf16.msra.mxu1 %v779_v16  ;;  %696 = vmatprep.subr.bf16.mxu0 %v780_v17  ;;  %v817_v49 = vld [vmem:[%s1016_s1 + $0x180] sm:$0xff]   ;;  %v812_v54 = vld [vmem:[%s1016_s1 + $0x128] sm:$0xff]   ;;  %v814_v56 = vld [vmem:[%s1016_s1 + $0x130] sm:$0xff]  }
  0x12   :  { %718 = vmatprep.subr.bf16.mxu1 %v781_v18  ;;  %v815_v57 = vld [vmem:[%s1016_s1 + $0x178] sm:$0xff]  }
  0x13   :  { %v816_v58 = vld [vmem:[%s1016_s1 + $0x138] sm:$0xff]  }
  0x14   :  { %697 = vmatpush3.bf16.msra.mxu0 %v782_v19 }
  0x15   :  { %719 = vmatpush3.bf16.msra.mxu1 %v783_v20  ;;  %698 = vmatprep.subr.bf16.mxu0 %v784_v21 }
  0x16   :  { %720 = vmatprep.subr.bf16.mxu1 %v785_v22 }
  0x18   :  { %699 = vmatpush3.bf16.msra.mxu0 %v786_v23 }
  0x19   :  { %721 = vmatpush3.bf16.msra.mxu1 %v787_v24  ;;  %700 = vmatprep.subr.bf16.mxu0 %v788_v25 }
  0x1a   :  { %722 = vmatprep.subr.bf16.mxu1 %v789_v26 }
  0x1c   :  { %701 = vmatpush3.bf16.msra.mxu0 %v790_v27 }
  0x1d   :  { %723 = vmatpush3.bf16.msra.mxu1 %v791_v28  ;;  %702 = vmatprep.subr.bf16.mxu0 %v792_v29 }
  0x1e   :  { %724 = vmatprep.subr.bf16.mxu1 %v793_v30  ;;  %v605_v30 = vld [vmem:[%s1017_s3] sm:$0x3] }
  0x20   :  { %703 = vmatpush3.bf16.msra.mxu0 %v794_v31 }
  0x21   :  { %725 = vmatpush3.bf16.msra.mxu1 %v795_v32  ;;  %732 = vmatprep.subr.bf16.mxu0 %v801_v39 }
  0x22   :  { %756 = vmatprep.subr.bf16.mxu1 %v820_v1 }
  0x23   :  { %476 = vmatmul.mubr.bf16.vlgmr.msra.gmra.mrb[0].mxu0 %v631_v34 }
  0x24   :  { %516 = vmatmul.mubr.bf16.vlgmr.msra.gmra.mrb[0].mxu1 %v633_v37  ;;  %733 = vmatpush3.bf16.msra.mxu0 %v802_v40 }
  0x25   :  { %758 = vmatprep.mubr.msk.bf16.mxu1 %vm821_vm0, %v820_v1  ;;  %734 = vmatprep.subr.bf16.mxu0 %v803_v41 }
  0x26   :  { %757 = vmatpush3.bf16.msra.mxu1 %v817_v49  ;;  %555 = vmatprep.mubr.bf16.mxu0 %v636_v53 }
  0x28   :  { %735 = vmatpush3.bf16.msra.mxu0 %v804_v42 }
  0x29   :  { %736 = vmatprep.subr.bf16.mxu0 %v805_v43 }
  0x2c   :  { %737 = vmatpush3.bf16.msra.mxu0 %v806_v44  ;;  %759 = vmatmul.mubr.msk.bf16.vlgmr.msra.gmra.mrb[4].mxu1 %vm439_vm1, %v798_v51 }
  0x2d   :  { %738 = vmatprep.subr.bf16.mxu0 %v807_v45 }
  0x30   :  { %739 = vmatpush3.bf16.msra.mxu0 %v808_v46 }
  0x31   :  { %740 = vmatprep.subr.bf16.mxu0 %v809_v47 }
  0x34   :  { %741 = vmatpush3.bf16.msra.mxu0 %v810_v48 }
  0x35   :  { %742 = vmatprep.subr.bf16.mxu0 %v811_v52 }
  0x38   :  { %743 = vmatpush3.bf16.msra.mxu0 %v812_v54 }
  0x39   :  { %744 = vmatprep.subr.bf16.mxu0 %v813_v55 }
  0x3c   :  { %745 = vmatpush3.bf16.msra.mxu0 %v814_v56 }
  0x3d   :  { %746 = vmatprep.subr.bf16.mxu0 %v815_v57 }
  0x40   :  { %747 = vmatpush3.bf16.msra.mxu0 %v816_v58 }
  0x43   :  { %556 = vmatmul.mubr.bf16.vlgmr.msra.gmra.mrb[4].mxu0 %v635_v59 }
  0xf6   :  { %v704_v60 = vpop.f32.mrb[0].mxu0 }
  0xf7   :  { %v726_v61 = vpop.f32.mrb[0].mxu1  ;;  %v705_v62 = vpop.f32.mrb[1].mxu0 }
  0xf8   :  { %v706_v63 = vadd.f32 %v705_v62, %v704_v60  ;;  %v727_v0 = vpop.f32.mrb[1].mxu1  ;;  %v707_v1 = vpop.f32.mrb[2].mxu0 }
  0xf9   :  { %v728_v2 = vadd.f32 %v727_v0, %v726_v61  ;;  %v708_v3 = vpop.f32.mrb[3].mxu0  ;;  %v729_v4 = vpop.f32.mrb[2].mxu1 }
  0xfa   :  { %v730_v5 = vpop.f32.mrb[3].mxu1 }
  0xfb   :  { %v518_v6 = vadd.f32 %v728_v2, %v706_v63 }
  0xff   :  { %v597_v7 = vpop.f32.mrb[4].mxu1 }
 0x100   :  { %v760_v8 = vpop.f32.mrb[5].mxu1 }
 0x101   :  { %v600_v9 = vpop.f32.mrb[6].mxu1 }
 0x102   :  { %v761_v10 = vpop.f32.mrb[7].mxu1 }
 0x116   :  { %v748_v11 = vpop.f32.mrb[4].mxu0 }
 0x117   :  { %v749_v12 = vpop.f32.mrb[5].mxu0 }
 0x118   :  { %v750_v13 = vadd.f32 %v749_v12, %v748_v11  ;;  %v751_v14 = vpop.f32.mrb[6].mxu0 }
 0x119   :  { %v752_v15 = vpop.f32.mrb[7].mxu0 }
 0x11a   :  { %v558_v16 = vadd.f32 %v750_v13, %v518_v6 }
 0x11c   :  { %v598_v17 = vadd.f32 %v597_v7, %v558_v16 }
 0x11e   :  { %v603_v18 = vpack.c.bf16 %v598_v17, %v598_v17  ;;  %v606_v19 = vrot.slane %v598_v17, 4  ;;  %v612_v20 = vmul.f32 %v598_v17, %v598_v17 }
 0x120   :  { %604 = vst [vmem:[%s1019_s2] sm:$0xf] %v603_v18  ;;  %v607_v21 = vadd.f32 %v606_v19, %v598_v17  ;;  %v613_v22 = vrot.slane %v612_v20, 4 }
 0x122   :  { %v608_v23 = vrot.slane %v607_v21, 2  ;;  %v614_v24 = vadd.f32 %v613_v22, %v612_v20 }
 0x124   :  { %v609_v25 = vadd.f32 %v608_v23, %v607_v21  ;;  %v615_v26 = vrot.slane %v614_v24, 2 }
 0x126   :  { %v610_v27 = vrot.slane %v609_v25, 1  ;;  %v616_v28 = vadd.f32 %v615_v26, %v614_v24 }
 0x128   :  { %v617_v29 = vrot.slane %v616_v28, 1  ;;  %v611_v31 = vadd.f32 %v610_v27, %v609_v25 }
 0x12a   :  { %v618_v32 = vadd.f32 %v617_v29, %v616_v28 }
 0x12c   :  { %v620_v33 = vsel %vm619_vm2, %v611_v31, %v618_v32 }
 0x12d   :  { %v621_v34 = vadd.f32 %v620_v33, %v605_v30 }
 0x12f   :  { %622 = vst [vmem:[%s1017_s3] sm:$0x3] %v621_v34 }

// kernel: mynet_bn_forward.5
= control target key start
LH: loop header
LB: loop body
LE: loop exit
PB: predicated region body
PF: predicated region fallthrough
CT: control target
= control target key end

     0   :  { %v19_v1 = vlaneseq  ;;  %v226_v2 = vmov 0.0   ;;  %vm227_vm0 = vmmov 0   ;;  %s291_s0 = inlined_call_operand.vmem [shape: bf16[8,128], index: 0, kind: input, shape index: {}]   ;;  %s292_s1 = inlined_call_operand.vmem [shape: f32[3,128], index: 1, kind: input, shape index: {}]   ;;  %s293_s2 = inlined_call_operand.vmem [shape: bf16[128,128], index: 2, kind: input, shape index: {}]   ;;  %s294_s3 = inlined_call_operand.hbm [shape: f32[8,128], index: 3, kind: output, shape index: {}]  }
   0x1   :  { %v194_v0 = vld [vmem:[%s293_s2] sm:$0xff]   ;;  %171 = vmatprep.subr.bf16.mxu0 %v226_v2  ;;  %v195_v3 = vld [vmem:[%s293_s2 + $0x8] sm:$0xff]   ;;  %187 = vmatprep.mubr.msk.bf16.mxu0 %vm227_vm0, %v226_v2  ;;  %v196_v5 = vld [vmem:[%s293_s2 + $0x10] sm:$0xff]  }
   0x2   :  { %172 = vmatpush3.bf16.msra.mxu0 %v194_v0  ;;  %v20_v4 = vshrl.u32 %v19_v1, 7  ;;  %v16_v7 = vld [vmem:[%s292_s1] sm:$0x7] }
   0x3   :  { %173 = vmatprep.subr.bf16.mxu0 %v226_v2 }
   0x4   :  { %v49_v6 = vsub.s32 2, %v20_v4 }
   0x6   :  { %174 = vmatpush3.bf16.msra.mxu0 %v195_v3 }
   0x7   :  { %175 = vmatprep.subr.bf16.mxu0 %v226_v2 }
   0x8   :  { %8 = vsyncpa [#allocation3], 0  ;;  %v21_v8 = vsub.s32 0, %v20_v4  ;;  %v50_v9 = vrot.slane %v16_v7, %v49_v6  ;;  %v197_v10 = vld [vmem:[%s293_s2 + $0x18] sm:$0xff]   ;;  %v17_v11 = vld [vmem:[%s291_s0] sm:$0xf] }
   0x9   :  { %v18_v12 = vunpack.c.l.bf16 %v17_v11  ;;  %v26_v14 = vsub.s32 1, %v20_v4  ;;  %v198_v15 = vld [vmem:[%s293_s2 + $0x20] sm:$0xff]   ;;  %v199_v18 = vld [vmem:[%s293_s2 + $0x28] sm:$0xff]   ;;  %v200_v20 = vld [vmem:[%s293_s2 + $0x30] sm:$0xff]   ;;  %s228_s30 = smov [#allocation2]  }
   0xa   :  { %176 = vmatpush3.bf16.msra.mxu0 %v196_v5  ;;  %v22_v13 = vrot.slane %v16_v7, %v21_v8  ;;  %v201_v22 = vld [vmem:[%s293_s2 + $0x38] sm:$0xff]   ;;  %s146_s4 = sshll.u32 %s228_s30, 4  ;;  %s147_s4 = int_to_ptr.vmem [resolvable:$true] %s146_s4 }
   0xb   :  { %177 = vmatprep.subr.bf16.mxu0 %v226_v2  ;;  %v27_v17 = vrot.slane %v16_v7, %v26_v14  ;;  %s202_s5 = scalar_lea.vmem %s147_s4, 128  ;;  %p207_p1 = scmp.lt.s32.totalorder %s147_s4, %s147_s4 }
   0xc   :  { %v23_v16 = vmul.f32 %v22_v13, %v18_v12  ;;  %p203_p0 = scmp.ne.s32.totalorder %s147_s4, %s202_s5  ;;  %p208_p2 = scmp.lt.s32.totalorder %s202_s5, %s202_s5 }
   0xe   :  { %178 = vmatpush3.bf16.msra.mxu0 %v197_v10  ;;  %v28_v19 = vadd.f32 %v27_v17, %v23_v16  ;;  %p209_p3 = por %p208_p2, %p207_p1 }
   0xf   :  { %179 = vmatprep.subr.bf16.mxu0 %v226_v2 }
  0x10   :  { %v29_v21 = vmax.f32 %v28_v19, 0.0  ;;  %p210_p4 = pnand %p209_p3, %p203_p0 }
  0x12   :  { %180 = vmatpush3.bf16.msra.mxu0 %v198_v15  ;;  %v30_v23 = vpack.c.bf16 %v29_v21, %v29_v21 }
  0x13   :  { %181 = vmatprep.subr.bf16.mxu0 %v226_v2 }
  0x16   :  { %182 = vmatpush3.bf16.msra.mxu0 %v199_v18 }
  0x17   :  { %183 = vmatprep.subr.bf16.mxu0 %v226_v2 }
  0x1a   :  { %184 = vmatpush3.bf16.msra.mxu0 %v200_v20 }
  0x1b   :  { %185 = vmatprep.subr.bf16.mxu0 %v226_v2 }
  0x1e   :  { %186 = vmatpush3.bf16.msra.mxu0 %v201_v22 }
  0x21   :  { %188 = vmatmul.mubr.bf16.vlgmr.msra.gmra.mrb[0].mxu0 %v30_v23 }
  0xf4   :  { %v133_v24 = vpop.f32.mrb[0].mxu0 }
  0xf5   :  { %v134_v25 = vadd.f32 %v133_v24, %v50_v9  ;;  %v189_v26 = vpop.f32.mrb[1].mxu0 }
  0xf6   :  { %v136_v27 = vpop.f32.mrb[2].mxu0 }
  0xf7   :  { %139 = vst [vmem:[#allocation2] sm:$0xff] %v134_v25  ;;  %v190_v28 = vpop.f32.mrb[3].mxu0 }
  0xf8   :  { %213 = shalt.err (!%p210_p4)
}
  0xf9   :  { %s214_s7 = scalar_lea.hbm %s294_s3, 128 }
  0xfa   :  { %p215_p5 = scmp.ne.s32.totalorder %s294_s3, %s214_s7  ;;  %p218_p6 = scmp.lt.u32.totalorder %s214_s7, %s294_s3 }
  0xfc   :  { %p220_p7 = pnand %p218_p6, %p215_p5 }
  0xfe   :  { %223 = shalt.err (!%p220_p7)
}
  0xff   :  { %149 = dma.vmem_to_hbm [thread:$0]  %s147_s4, 128, %s294_s3, [#allocation3]  }
 0x100   :  { %224 = dma.done.wait [#allocation3], 128  }
 0x101   :  { %225 = vsyncadd [#allocation3], 4294967168 }
 0x102   :  { %153 = vsyncpa [#allocation3], 1 }

</bundles_post_ra>
